<compile_context>
chip_gen: v6e
topology: v6e:2x2x1
jax: 0.10.0
libtpu: 0.0.40
codegen_flags: <defaults>
</compile_context>

<pallas_src>
import jax
import jax.numpy as jnp
import numpy as np
from jax import lax
from jax.experimental import pallas as pl
from jax.experimental.pallas import tpu as pltpu

LANES = 128           # vreg lane width: last dim of every block
SUBLANES = 8
MAX_TILE_ROWS = 512   # (512,128) f32 tile = 256 KiB/input; x2 inputs x2
                      # double-buffers ~= 1 MiB -> safe on every generation


def _l1_sum_kernel(x_ref, y_ref, o_ref, acc_ref):
    step = pl.program_id(0)

    @pl.when(step == 0)
    def _():
        acc_ref[...] = jnp.zeros_like(acc_ref)

    d = jnp.abs(x_ref[...].astype(jnp.float32) - y_ref[...].astype(jnp.float32))
    # per-lane partial sums (sublane reduce) each step; the cross-lane reduce
    # happens once, on the final step.
    acc_ref[...] += jnp.sum(d, axis=0, keepdims=True)

    @pl.when(step == pl.num_programs(0) - 1)
    def _():
        o_ref[...] = jnp.sum(acc_ref[...], axis=1, keepdims=True)


def pix_loss(x, y):
    """mean(|x - y.detach()|)  == PixLoss.forward with nn.L1Loss()."""
    y = lax.stop_gradient(y)                      # y.detach()
    n = x.size

    # Flatten into a lane-dense (rows, 128) layout, zero-padded so the row
    # count divides evenly into the tile.  Padded entries are 0 in BOTH inputs
    # so |diff| = 0 there and the sum is unaffected.
    rows = -(-n // LANES)
    tile_rows = min(MAX_TILE_ROWS, -(-rows // SUBLANES) * SUBLANES)
    rows_p = -(-rows // tile_rows) * tile_rows
    pad = rows_p * LANES - n

    xf = jnp.pad(jnp.ravel(x), (0, pad)).reshape(rows_p, LANES)
    yf = jnp.pad(jnp.ravel(y), (0, pad)).reshape(rows_p, LANES)

    grid = (rows_p // tile_rows,)
    total = pl.pallas_call(
        _l1_sum_kernel,
        out_shape=jax.ShapeDtypeStruct((1, 1), jnp.float32),
        grid_spec=pltpu.PrefetchScalarGridSpec(
            num_scalar_prefetch=0,
            grid=grid,
            in_specs=[
                pl.BlockSpec((tile_rows, LANES), lambda i: (i, 0)),
                pl.BlockSpec((tile_rows, LANES), lambda i: (i, 0)),
            ],
            out_specs=pl.BlockSpec((1, 1), lambda i: (0, 0)),
            scratch_shapes=[pltpu.VMEM((1, LANES), jnp.float32)],
        ),
        compiler_params=pltpu.CompilerParams(
            dimension_semantics=("arbitrary",)),   # reduction axis
        cost_estimate=pl.CostEstimate(
            flops=3 * rows_p * LANES,
            transcendentals=0,
            bytes_accessed=2 * rows_p * LANES * xf.dtype.itemsize + 4),
    )(xf, yf)

    return total[0, 0] / jnp.float32(n)


if __name__ == "__main__":
    key = jax.random.PRNGKey(0)
    kx, ky, kx2, ky2 = jax.random.split(key, 4)

    # small NCHW inputs consistent with the module's forward(x, y)
    N, C, H, W = 2, 4, 16, 16
    x = jax.random.normal(kx, (N, C, H, W), jnp.float32)
    y = jax.random.normal(ky, (N, C, H, W), jnp.float32)

    run = jax.jit(pix_loss)
    loss = jax.block_until_ready(run(x, y))
    ref = jnp.mean(jnp.abs(x - y))
    assert np.isfinite(float(loss))
    assert abs(float(loss) - float(ref)) <= 1e-4 * max(1.0, abs(float(ref))), (
        float(loss), float(ref))

    # larger input that exercises the multi-tile accumulator path (grid > 1)
    x2 = jax.random.normal(kx2, (2, 3, 128, 128), jnp.float32)
    y2 = jax.random.normal(ky2, (2, 3, 128, 128), jnp.float32)
    loss2 = jax.block_until_ready(run(x2, y2))
    ref2 = jnp.mean(jnp.abs(x2 - y2))
    assert abs(float(loss2) - float(ref2)) <= 1e-4 * max(1.0, abs(float(ref2))), (
        float(loss2), float(ref2))

    print("KERNEL_OK")
</pallas_src>

<mosaic_0001>
module attributes {stable_mosaic.version = 11 : i64} {
  func.func @_l1_sum_kernel(%arg0: i32, %arg1: memref<16x128xf32, #tpu.memory_space<vmem>>, %arg2: memref<16x128xf32, #tpu.memory_space<vmem>>, %arg3: memref<1x1xf32, #tpu.memory_space<vmem>>, %arg4: memref<1x128xf32, #tpu.memory_space<vmem>>) attributes {dimension_semantics = [#tpu.dimension_semantics<arbitrary>], iteration_bounds = array<i64: 1>, scalar_prefetch = 0 : i64, scratch_operands = 1 : i64, tpu.core_type = #tpu.core_type<tc>, window_params = [{transform_indices = @transform_0, window_bounds = array<i64: 16, 128>}, {transform_indices = @transform_1, window_bounds = array<i64: 16, 128>}, {pipeline_mode = #tpu.pipeline_mode<synchronous>, transform_indices = @transform_2, window_bounds = array<i64: 1, 1>}]} {
    %c0_i32 = arith.constant 0 : i32
    %0 = arith.cmpi eq, %arg0, %c0_i32 : i32
    %1 = arith.extui %0 : i1 to i32
    %c0_i32_0 = arith.constant 0 : i32
    %2 = arith.cmpi ne, %1, %c0_i32_0 : i32
    scf.if %2 {
      %cst_10 = arith.constant 0.000000e+00 : f32
      %15 = vector.broadcast %cst_10 : f32 to vector<1x128xf32>
      %c0_11 = arith.constant 0 : index
      %c0_12 = arith.constant 0 : index
      %16 = vector.load %arg4[%c0_11, %c0_12] : memref<1x128xf32, #tpu.memory_space<vmem>>, vector<1x128xf32>
      tpu.vector_store %arg4[%c0_11, %c0_12], %15 {strides = array<i32>} : memref<1x128xf32, #tpu.memory_space<vmem>>, vector<1x128xf32>,
    } else {
    }
    %c0 = arith.constant 0 : index
    %c0_1 = arith.constant 0 : index
    %3 = vector.load %arg1[%c0, %c0_1] : memref<16x128xf32, #tpu.memory_space<vmem>>, vector<16x128xf32>
    %c0_2 = arith.constant 0 : index
    %c0_3 = arith.constant 0 : index
    %4 = vector.load %arg2[%c0_2, %c0_3] : memref<16x128xf32, #tpu.memory_space<vmem>>, vector<16x128xf32>
    %5 = arith.subf %3, %4 : vector<16x128xf32>
    %6 = math.absf %5 : vector<16x128xf32>
    %c0_4 = arith.constant 0 : index
    %c0_5 = arith.constant 0 : index
    %7 = vector.load %arg4[%c0_4, %c0_5] : memref<1x128xf32, #tpu.memory_space<vmem>>, vector<1x128xf32>
    %cst = arith.constant dense<0.000000e+00> : vector<128xf32>
    %8 = vector.multi_reduction <add>, %6, %cst [0] : vector<16x128xf32> to vector<128xf32>
    %9 = vector.shape_cast %8 : vector<128xf32> to vector<1x128xf32>
    %10 = arith.addf %7, %9 : vector<1x128xf32>
    %c0_6 = arith.constant 0 : index
    %c0_7 = arith.constant 0 : index
    %11 = vector.load %arg4[%c0_6, %c0_7] : memref<1x128xf32, #tpu.memory_space<vmem>>, vector<1x128xf32>
    tpu.vector_store %arg4[%c0_6, %c0_7], %10 {strides = array<i32>} : memref<1x128xf32, #tpu.memory_space<vmem>>, vector<1x128xf32>,
    %c0_i32_8 = arith.constant 0 : i32
    %12 = arith.cmpi eq, %arg0, %c0_i32_8 : i32
    %13 = arith.extui %12 : i1 to i32
    %c0_i32_9 = arith.constant 0 : i32
    %14 = arith.cmpi ne, %13, %c0_i32_9 : i32
    scf.if %14 {
      %c0_10 = arith.constant 0 : index
      %c0_11 = arith.constant 0 : index
      %15 = vector.load %arg4[%c0_10, %c0_11] : memref<1x128xf32, #tpu.memory_space<vmem>>, vector<1x128xf32>
      %cst_12 = arith.constant dense<0.000000e+00> : vector<1xf32>
      %16 = vector.multi_reduction <add>, %15, %cst_12 [1] : vector<1x128xf32> to vector<1xf32>
      %17 = vector.shape_cast %16 : vector<1xf32> to vector<1x1xf32>
      %c0_13 = arith.constant 0 : index
      %c0_14 = arith.constant 0 : index
      %18 = vector.load %arg3[%c0_13, %c0_14] : memref<1x1xf32, #tpu.memory_space<vmem>>, vector<1x1xf32>
      tpu.vector_store %arg3[%c0_13, %c0_14], %17 {strides = array<i32>} : memref<1x1xf32, #tpu.memory_space<vmem>>, vector<1x1xf32>,
    } else {
    }
    return
  }
  func.func @transform_0(%arg0: i32) -> (i32, i32) {
    %c0_i32 = arith.constant 0 : i32
    %c0_i32_0 = arith.constant 0 : i32
    return %arg0, %c0_i32 : i32, i32
  }
  func.func @transform_1(%arg0: i32) -> (i32, i32) {
    %c0_i32 = arith.constant 0 : i32
    %c0_i32_0 = arith.constant 0 : i32
    return %arg0, %c0_i32 : i32, i32
  }
  func.func @transform_2(%arg0: i32) -> (i32, i32) {
    %c0_i32 = arith.constant 0 : i32
    %c0_i32_0 = arith.constant 0 : i32
    %c0_i32_1 = arith.constant 0 : i32
    return %c0_i32, %c0_i32_0 : i32, i32
  }
}

</mosaic_0001>

<bundles_post_ra>
// kernel: pix_loss.1
= control target key start
LH: loop header
LB: loop body
LE: loop exit
PB: predicated region body
PF: predicated region fallthrough
CT: control target
= control target key end

     0   :  { %v83_v3 = vmov 0.0   ;;  %s115_s0 = inlined_call_operand.vmem [shape: f32[16,128], index: 0, kind: input, shape index: {}]   ;;  %s116_s1 = inlined_call_operand.vmem [shape: f32[16,128], index: 1, kind: input, shape index: {}]   ;;  %s117_s2 = inlined_call_operand.hbm [shape: f32[1,1], index: 2, kind: output, shape index: {}]  }
   0x1   :  { %v17_v0 = vld [vmem:[%s115_s0] sm:$0xff]  ;;  %v18_v1 = vld [vmem:[%s115_s0 + $0x8] sm:$0xff]  ;;  %16 = vst [vmem:[#allocation2] sm:$0x1] %v83_v3 }
   0x2   :  { %v19_v2 = vld [vmem:[%s116_s1] sm:$0xff]  ;;  %v20_v4 = vld [vmem:[%s116_s1 + $0x8] sm:$0xff] }
   0x3   :  { %v21_v5 = vsub.f32 %v17_v0, %v19_v2 }
   0x4   :  { %7 = vsyncpa [#allocation4], 0  ;;  %v22_v6 = vsub.f32 %v18_v1, %v20_v4  ;;  %vm39_vm0 = vcmask 1040384   ;;  %s84_s0 = smov [#allocation3]   ;;  %vm43_vm1 = vcmask 0  }
   0x5   :  { %v23_v7 = vand.u32 2147483647, %v21_v5  ;;  %s51_s1 = sshll.u32 %s84_s0, 4  ;;  %s52_s1 = int_to_ptr.vmem [resolvable:$true] %s51_s1 }
   0x6   :  { %v24_v8 = vand.u32 2147483647, %v22_v6  ;;  %s61_s17 = scalar_lea.vmem %s52_s1, 16  ;;  %s65_s18 = scalar_lea.vmem %s52_s1, 32 }
   0x7   :  { %p62_p0 = scmp.ne.s32.totalorder %s52_s1, %s61_s17  ;;  %p66_p1 = scmp.lt.s32.totalorder %s52_s1, %s52_s1 }
   0x8   :  { %v26_v9 = vadd.f32 %v24_v8, %v23_v7  ;;  %v25_v15 = vld [vmem:[#allocation2] sm:$0x1]  ;;  %p67_p2 = scmp.lt.s32.totalorder %s65_s18, %s61_s17 }
   0xa   :  { %v27_v10 = vrot.slane %v26_v9, 4  ;;  %p68_p3 = por %p67_p2, %p66_p1 }
   0xc   :  { %v28_v11 = vadd.f32 %v27_v10, %v26_v9  ;;  %p69_p4 = pnand %p68_p3, %p62_p0 }
   0xe   :  { %v29_v12 = vrot.slane %v28_v11, 2 }
  0x10   :  { %v30_v13 = vadd.f32 %v29_v12, %v28_v11 }
  0x12   :  { %v31_v14 = vrot.slane %v30_v13, 1 }
  0x14   :  { %v32_v16 = vadd.f32 %v31_v14, %v30_v13 }
  0x16   :  { %v33_v17 = vadd.f32 %v32_v16, %v25_v15 }
  0x18   :  { %34 = vst [vmem:[#allocation2] sm:$0x1] %v33_v17 }
  0x1f   :  { %v38_v18 = vld [vmem:[#allocation2] sm:$0x1] }
  0x20   :  { %v40_v19 = vsel %vm39_vm0, %v38_v18, 0.0 }
  0x21   :  { %41 = vadd.xlane.f32.xlu0 %v40_v19 }
  0xaa   :  { %v42_v20 = vpop.xlane.xlu0 %41 }
  0xab   :  { %44 = vst.msk [vmem:[#allocation3] sm:$0x1] %vm43_vm1, %v42_v20 }
  0xac   :  { %72 = shalt.err (!%p69_p4)
}
  0xad   :  { %54 = dma.vmem_to_hbm [thread:$0]  %s52_s1, 16, %s117_s2, [#allocation4]  }
  0xae   :  { %81 = dma.done.wait [#allocation4], 16  }
  0xaf   :  { %82 = vsyncadd [#allocation4], 4294967280 }
  0xb0   :  { %58 = vsyncpa [#allocation4], 1 }

</bundles_post_ra>
